<compile_context>
chip_gen: v6e
topology: v6e:2x2x1
jax: 0.10.0
libtpu: 0.0.40
codegen_flags: <defaults>
</compile_context>

<pallas_src>
import jax
import jax.numpy as jnp
from jax.experimental import pallas as pl
from jax.experimental.pallas import tpu as pltpu


def gcn_mean_agg_kernel(adj_ref, h_ref, out_ref, deg_ref):
    # adj_ref: (tm, tk) adjacency tile (row = destination, col = source)
    # h_ref:   (tk, tn) embedding tile (same compute dtype as adj)
    # out_ref: (tm, tn) f32 output tile, resident across the k axis (accumulator)
    # deg_ref: (tm, 1)  f32 in-degree accumulator scratch
    k = pl.program_id(2)

    @pl.when(k == 0)
    def _init():
        out_ref[...] = jnp.zeros_like(out_ref)
        deg_ref[...] = jnp.zeros_like(deg_ref)

    # Partial message sum over this k-slab of source nodes.
    # Operands stay in their native (bf16) dtype -> fast MXU path; f32 acc.
    out_ref[...] += jnp.dot(adj_ref[...], h_ref[...],
                            preferred_element_type=jnp.float32)

    # Partial in-degree (XLU row reduce, f32 accumulation; off the MXU path).
    deg_ref[...] += jnp.sum(adj_ref[...], axis=-1, keepdims=True,
                            dtype=jnp.float32)

    @pl.when(k == pl.num_programs(2) - 1)
    def _finalize():
        deg = deg_ref[...]
        # Safe mean: divide by max(deg, 1), then mask zero-degree rows to 0.
        inv_deg = jnp.where(deg > 0.0, 1.0 / jnp.maximum(deg, 1.0), 0.0)
        out_ref[...] = out_ref[...] * inv_deg


def gcn_layer(adj: jax.Array, embeddings: jax.Array,
              *, tm: int | None = None, tn: int | None = None,
              tk: int | None = None,
              compute_dtype=jnp.bfloat16) -> jax.Array:
    """Mean-aggregation GCN layer.

    adj:        (N, N) dense adjacency; adj[v, u] = 1 iff edge u->v.
    embeddings: (N, D) node embeddings.
    Returns f32 (N, D). Matmul runs in `compute_dtype` (bf16 default) with
    f32 accumulation; pass compute_dtype=jnp.float32 for full-precision parity.
    """
    N, D = embeddings.shape
    assert adj.shape == (N, N)

    # Same dtype on both operands so the dot is not silently promoted to f32.
    adj_c = adj.astype(compute_dtype)          # 0/1 is exact in bf16
    h_c = embeddings.astype(compute_dtype)

    # Tile defaults:
    #   tn = D  -> the N^2 adjacency (dominant HBM stream) is read exactly once.
    #   tm = 256, tk up to 2048 -> MXU-aligned (256 for v6e/v7x), big enough to
    #   amortize the ~0.35 us/step grid overhead; VMEM stays far under 64 MiB.
    tm = tm if tm is not None else min(N, 256)
    tn = tn if tn is not None else min(D, 2048)
    tk = tk if tk is not None else min(N, 2048)
    assert N % tm == 0 and D % tn == 0 and N % tk == 0, \
        "tile sizes must divide (N, D, N)"

    itemsize = jnp.dtype(compute_dtype).itemsize
    cost = pl.CostEstimate(
        flops=2 * N * N * D + N * N,                     # matmul + degree reduce
        transcendentals=0,
        bytes_accessed=(N * N * itemsize * (D // tn)     # adj, streamed D/tn times
                        + N * D * itemsize * (N // tm)   # h,   streamed N/tm times
                        + N * D * 4),                    # f32 output
    )

    grid = (N // tm, D // tn, N // tk)
    return pl.pallas_call(
        gcn_mean_agg_kernel,
        out_shape=jax.ShapeDtypeStruct((N, D), jnp.float32),
        grid_spec=pltpu.PrefetchScalarGridSpec(
            num_scalar_prefetch=0,
            grid=grid,
            in_specs=[
                pl.BlockSpec((tm, tk), lambda i, j, k: (i, k)),   # adjacency tile
                pl.BlockSpec((tk, tn), lambda i, j, k: (k, j)),   # embedding tile
            ],
            out_specs=pl.BlockSpec((tm, tn), lambda i, j, k: (i, j)),
            scratch_shapes=[
                pltpu.VMEM((tm, 1), jnp.float32),   # in-degree accumulator
            ],
        ),
        compiler_params=pltpu.CompilerParams(
            dimension_semantics=("parallel", "parallel", "arbitrary"),
            # Above v5e's 16 MiB scoped default, within v7x's 64 MiB physical.
            vmem_limit_bytes=64 * 1024 * 1024,
        ),
        cost_estimate=cost,
    )(adj_c, h_c)


if __name__ == "__main__":
    # GCNLayer.__init__ has no parameters -> nothing to initialize.
    key = jax.random.PRNGKey(0)
    k_src, k_dst, k_emb = jax.random.split(key, 3)

    N = 256    # number of graph nodes
    D = 128    # embedding dim
    E = 1024   # number of directed edges

    # Deterministic synthetic edge list (u -> v).
    src = jax.random.randint(k_src, (E,), 0, N)
    dst = jax.random.randint(k_dst, (E,), 0, N)

    # Dense adjacency: adj[v, u] = 1 iff edge u -> v. Duplicate edges collapse
    # to 1 (a simple DGLGraph); a multigraph mean would count parallel edges.
    adj_f32 = jnp.zeros((N, N), jnp.float32).at[dst, src].set(1.0)
    adj = adj_f32.astype(jnp.bfloat16)

    embeddings = jax.random.normal(k_emb, (N, D), dtype=jnp.float32)

    # References.
    deg = jnp.sum(adj_f32, axis=-1, keepdims=True)
    emb_bf = embeddings.astype(jnp.bfloat16).astype(jnp.float32)

    def ref_mean(h_f32):
        num = jnp.dot(adj_f32, h_f32, precision=jax.lax.Precision.HIGHEST)
        return jnp.where(deg > 0, num / jnp.maximum(deg, 1.0), 0.0)

    ref_bf16_inputs = ref_mean(emb_bf)       # same bf16-rounded inputs as kernel
    ref_f32 = ref_mean(embeddings)

    # 1) Default config: bf16 compute, single block (grid (1,1,1)) at this size.
    out_default = jax.block_until_ready(gcn_layer(adj, embeddings))
    err = float(jnp.max(jnp.abs(out_default - ref_bf16_inputs)))
    assert jnp.allclose(out_default, ref_bf16_inputs, atol=1e-4, rtol=1e-4), err

    # 2) Forced tiling (grid (2,1,2)) to exercise the k-axis accumulation path.
    out_tiled = jax.block_until_ready(
        gcn_layer(adj, embeddings, tm=128, tn=128, tk=128))
    err = float(jnp.max(jnp.abs(out_tiled - ref_bf16_inputs)))
    assert jnp.allclose(out_tiled, ref_bf16_inputs, atol=1e-4, rtol=1e-4), err

    # 3) Full-precision path (compute_dtype=f32) matches the f32 reference.
    out_f32 = jax.block_until_ready(
        gcn_layer(adj_f32, embeddings, tm=128, tn=128, tk=128,
                  compute_dtype=jnp.float32))
    err = float(jnp.max(jnp.abs(out_f32 - ref_f32)))
    assert jnp.allclose(out_f32, ref_f32, atol=1e-4, rtol=1e-4), err

    print("KERNEL_OK")
</pallas_src>

<mosaic_0001>
module attributes {stable_mosaic.version = 11 : i64} {
  func.func @gcn_mean_agg_kernel(%arg0: i32, %arg1: i32, %arg2: i32, %arg3: memref<256x256xbf16, #tpu.memory_space<vmem>>, %arg4: memref<256x128xbf16, #tpu.memory_space<vmem>>, %arg5: memref<256x128xf32, #tpu.memory_space<vmem>>, %arg6: memref<256x1xf32, #tpu.memory_space<vmem>>) attributes {dimension_semantics = [#tpu.dimension_semantics<parallel>, #tpu.dimension_semantics<parallel>, #tpu.dimension_semantics<arbitrary>], iteration_bounds = array<i64: 1, 1, 1>, scalar_prefetch = 0 : i64, scratch_operands = 1 : i64, tpu.core_type = #tpu.core_type<tc>, window_params = [{transform_indices = @transform_0, window_bounds = array<i64: 256, 256>}, {transform_indices = @transform_1, window_bounds = array<i64: 256, 128>}, {transform_indices = @transform_2, window_bounds = array<i64: 256, 128>}]} {
    %c0_i32 = arith.constant 0 : i32
    %0 = arith.cmpi eq, %arg2, %c0_i32 : i32
    %1 = arith.extui %0 : i1 to i32
    %c0_i32_0 = arith.constant 0 : i32
    %2 = arith.cmpi ne, %1, %c0_i32_0 : i32
    scf.if %2 {
      %cst_17 = arith.constant 0.000000e+00 : f32
      %19 = vector.broadcast %cst_17 : f32 to vector<256x128xf32>
      %c0_18 = arith.constant 0 : index
      %c0_19 = arith.constant 0 : index
      %20 = vector.load %arg5[%c0_18, %c0_19] : memref<256x128xf32, #tpu.memory_space<vmem>>, vector<256x128xf32>
      tpu.vector_store %arg5[%c0_18, %c0_19], %19 {strides = array<i32>} : memref<256x128xf32, #tpu.memory_space<vmem>>, vector<256x128xf32>,
      %cst_20 = arith.constant 0.000000e+00 : f32
      %21 = vector.broadcast %cst_20 : f32 to vector<256x1xf32>
      %c0_21 = arith.constant 0 : index
      %c0_22 = arith.constant 0 : index
      %22 = vector.load %arg6[%c0_21, %c0_22] : memref<256x1xf32, #tpu.memory_space<vmem>>, vector<256x1xf32>
      tpu.vector_store %arg6[%c0_21, %c0_22], %21 {strides = array<i32>} : memref<256x1xf32, #tpu.memory_space<vmem>>, vector<256x1xf32>,
    } else {
    }
    %c0 = arith.constant 0 : index
    %c0_1 = arith.constant 0 : index
    %3 = vector.load %arg5[%c0, %c0_1] : memref<256x128xf32, #tpu.memory_space<vmem>>, vector<256x128xf32>
    %c0_2 = arith.constant 0 : index
    %c0_3 = arith.constant 0 : index
    %4 = vector.load %arg3[%c0_2, %c0_3] : memref<256x256xbf16, #tpu.memory_space<vmem>>, vector<256x256xbf16>
    %c0_4 = arith.constant 0 : index
    %c0_5 = arith.constant 0 : index
    %5 = vector.load %arg4[%c0_4, %c0_5] : memref<256x128xbf16, #tpu.memory_space<vmem>>, vector<256x128xbf16>
    %cst = arith.constant dense<0.000000e+00> : vector<256x128xf32>
    %6 = tpu.matmul %4, %5, %cst {dimension_numbers = #tpu.dot_dimension_numbers<[1], [0], [0], [1], [0, 0, 1, 1], [], []>} : vector<256x256xbf16>, vector<256x128xbf16>, vector<256x128xf32> -> vector<256x128xf32>
    %7 = arith.addf %3, %6 : vector<256x128xf32>
    %c0_6 = arith.constant 0 : index
    %c0_7 = arith.constant 0 : index
    %8 = vector.load %arg5[%c0_6, %c0_7] : memref<256x128xf32, #tpu.memory_space<vmem>>, vector<256x128xf32>
    tpu.vector_store %arg5[%c0_6, %c0_7], %7 {strides = array<i32>} : memref<256x128xf32, #tpu.memory_space<vmem>>, vector<256x128xf32>,
    %c0_8 = arith.constant 0 : index
    %c0_9 = arith.constant 0 : index
    %9 = vector.load %arg6[%c0_8, %c0_9] : memref<256x1xf32, #tpu.memory_space<vmem>>, vector<256x1xf32>
    %c0_10 = arith.constant 0 : index
    %c0_11 = arith.constant 0 : index
    %10 = vector.load %arg3[%c0_10, %c0_11] : memref<256x256xbf16, #tpu.memory_space<vmem>>, vector<256x256xbf16>
    %11 = arith.extf %10 : vector<256x256xbf16> to vector<256x256xf32>
    %cst_12 = arith.constant dense<0.000000e+00> : vector<256xf32>
    %12 = vector.multi_reduction <add>, %11, %cst_12 [1] : vector<256x256xf32> to vector<256xf32>
    %13 = vector.shape_cast %12 : vector<256xf32> to vector<256x1xf32>
    %14 = arith.addf %9, %13 : vector<256x1xf32>
    %c0_13 = arith.constant 0 : index
    %c0_14 = arith.constant 0 : index
    %15 = vector.load %arg6[%c0_13, %c0_14] : memref<256x1xf32, #tpu.memory_space<vmem>>, vector<256x1xf32>
    tpu.vector_store %arg6[%c0_13, %c0_14], %14 {strides = array<i32>} : memref<256x1xf32, #tpu.memory_space<vmem>>, vector<256x1xf32>,
    %c0_i32_15 = arith.constant 0 : i32
    %16 = arith.cmpi eq, %arg2, %c0_i32_15 : i32
    %17 = arith.extui %16 : i1 to i32
    %c0_i32_16 = arith.constant 0 : i32
    %18 = arith.cmpi ne, %17, %c0_i32_16 : i32
    scf.if %18 {
      %c0_17 = arith.constant 0 : index
      %c0_18 = arith.constant 0 : index
      %19 = vector.load %arg6[%c0_17, %c0_18] : memref<256x1xf32, #tpu.memory_space<vmem>>, vector<256x1xf32>
      %cst_19 = arith.constant 0.000000e+00 : f32
      %20 = vector.broadcast %cst_19 : f32 to vector<256x1xf32>
      %21 = arith.cmpf ogt, %19, %20 : vector<256x1xf32>
      %cst_20 = arith.constant 1.000000e+00 : f32
      %22 = vector.broadcast %cst_20 : f32 to vector<256x1xf32>
      %23 = arith.maximumf %19, %22 : vector<256x1xf32>
      %cst_21 = arith.constant 1.000000e+00 : f32
      %24 = vector.broadcast %cst_21 : f32 to vector<256x1xf32>
      %25 = arith.divf %24, %23 : vector<256x1xf32>
      %cst_22 = arith.constant 0.000000e+00 : f32
      %26 = vector.broadcast %cst_22 : f32 to vector<256x1xf32>
      %27 = arith.select %21, %25, %26 : vector<256x1xi1>, vector<256x1xf32>
      %c0_23 = arith.constant 0 : index
      %c0_24 = arith.constant 0 : index
      %28 = vector.load %arg5[%c0_23, %c0_24] : memref<256x128xf32, #tpu.memory_space<vmem>>, vector<256x128xf32>
      %29 = vector.broadcast %27 : vector<256x1xf32> to vector<256x128xf32>
      %30 = arith.mulf %28, %29 : vector<256x128xf32>
      %c0_25 = arith.constant 0 : index
      %c0_26 = arith.constant 0 : index
      %31 = vector.load %arg5[%c0_25, %c0_26] : memref<256x128xf32, #tpu.memory_space<vmem>>, vector<256x128xf32>
      tpu.vector_store %arg5[%c0_25, %c0_26], %30 {strides = array<i32>} : memref<256x128xf32, #tpu.memory_space<vmem>>, vector<256x128xf32>,
    } else {
    }
    return
  }
  func.func @transform_0(%arg0: i32, %arg1: i32, %arg2: i32) -> (i32, i32) {
    %c0_i32 = arith.constant 0 : i32
    return %arg0, %arg2 : i32, i32
  }
  func.func @transform_1(%arg0: i32, %arg1: i32, %arg2: i32) -> (i32, i32) {
    %c0_i32 = arith.constant 0 : i32
    return %arg2, %arg1 : i32, i32
  }
  func.func @transform_2(%arg0: i32, %arg1: i32, %arg2: i32) -> (i32, i32) {
    %c0_i32 = arith.constant 0 : i32
    return %arg0, %arg1 : i32, i32
  }
}

</mosaic_0001>

<bundles_post_ra>
// kernel: tpu_custom_call.1
= control target key start
LH: loop header
LB: loop body
LE: loop exit
PB: predicated region body
PF: predicated region fallthrough
CT: control target
= control target key end

     0   :  { %7 = vsyncpa [#allocation4], 0  ;;  %s2277_s0 = inlined_call_operand.hbm [shape: bf16[256,256], index: 0, kind: input, shape index: {}]   ;;  %s2278_s1 = inlined_call_operand.hbm [shape: bf16[256,128], index: 1, kind: input, shape index: {}]   ;;  %s2279_s2 = inlined_call_operand.hbm [shape: f32[256,128], index: 2, kind: output, shape index: {}]  }
   0x1   :  { %8 = vsyncpa [#allocation7], 0 }
   0x2   :  { %9 = vsyncpa [#allocation5], 0  ;;  %s1808_s9 = smov [#allocation3]  }
   0x3   :  { %s15_s10 = sshll.u32 %s1808_s9, 4  ;;  %s16_s10 = int_to_ptr.vmem [resolvable:$true] %s15_s10 }
   0x4   :  { %s1750_s11 = scalar_lea.vmem %s16_s10, 4096  ;;  %p1755_p1 = scmp.lt.s32.totalorder %s16_s10, %s16_s10 }
   0x5   :  { %p1751_p0 = scmp.ne.s32.totalorder %s16_s10, %s1750_s11  ;;  %p1756_p2 = scmp.lt.s32.totalorder %s1750_s11, %s1750_s11 }
   0x7   :  { %p1757_p3 = por %p1756_p2, %p1755_p1 }
   0x9   :  { %p1758_p4 = pnand %p1757_p3, %p1751_p0 }
   0xb   :  { %1761 = shalt.err (!%p1758_p4)
}
   0xc   :  { %s1809_s12 = smov 128   ;;  %s1810_s13 = smov 8  }
   0xd   :  { %21 = dma.hbm_to_vmem [thread:$0]  %s2277_s0, 4096, %s16_s10, [#allocation4], %s1809_s12, %s1809_s12, %s1810_s13  }
   0xe   :  { %s1811_s16 = smov [#allocation6]  }
   0xf   :  { %s27_s17 = sshll.u32 %s1811_s16, 4  ;;  %s28_s17 = int_to_ptr.vmem [resolvable:$true] %s27_s17 }
  0x10   :  { %s1770_s18 = scalar_lea.vmem %s28_s17, 2048  ;;  %p1775_p6 = scmp.lt.s32.totalorder %s28_s17, %s28_s17 }
  0x11   :  { %p1771_p5 = scmp.ne.s32.totalorder %s28_s17, %s1770_s18  ;;  %p1776_p7 = scmp.lt.s32.totalorder %s1770_s18, %s1770_s18 }
  0x13   :  { %p1777_p8 = por %p1776_p7, %p1775_p6 }
  0x15   :  { %p1778_p9 = pnand %p1777_p8, %p1771_p5 }
  0x17   :  { %1781 = shalt.err (!%p1778_p9)
}
  0x18   :  { %s1812_s19 = smov 64   ;;  %s1813_s20 = smov 4  }
  0x19   :  { %33 = dma.hbm_to_vmem [thread:$0]  %s2278_s1, 2048, %s28_s17, [#allocation7], %s1812_s19, %s1812_s19, %s1813_s20  }
  0x1a   :  { %1802 = dma.done.wait [#allocation4], 4096  }
  0x1b   :  { %1803 = vsyncadd [#allocation4], 4294963200 }
  0x1c   :  { %1804 = dma.done.wait [#allocation7], 2048  }
  0x1d   :  { %1805 = vsyncadd [#allocation7], 4294965248  ;;  %vm77_vm0 = vcmask 7168   ;;  %v1814_v0 = vmov 0.0   ;;  %v1873_v1 = vld [vmem:[#allocation3 + $0x10] sm:$0xff]  ;;  %v1875_v2 = vld [vmem:[#allocation3] sm:$0xff] }
  0x1e   :  { %80 = vst.msk [vmem:[#allocation2 + $0x10] sm:$0xff] %vm77_vm0, %v1814_v0  ;;  %78 = vst.msk [vmem:[#allocation2] sm:$0xff] %vm77_vm0, %v1814_v0  ;;  %v1877_v3 = vld [vmem:[#allocation3 + $0x18] sm:$0xff]  ;;  %v755_v4 = vunpack.c.l.bf16 %v1873_v1  ;;  %v756_v5 = vunpack.c.h.bf16 %v1873_v1  ;;  %v751_v6 = vunpack.c.l.bf16 %v1875_v2  ;;  %v752_v7 = vunpack.c.h.bf16 %v1875_v2  ;;  %v1883_v8 = vld [vmem:[#allocation3 + $0x8] sm:$0xff]  ;;  %s1816_s0 = smov [#allocation8]  }
  0x1f   :  { %79 = vst.msk [vmem:[#allocation2 + $0x8] sm:$0xff] %vm77_vm0, %v1814_v0  ;;  %81 = vst.msk [vmem:[#allocation2 + $0x18] sm:$0xff] %vm77_vm0, %v1814_v0  ;;  %v1885_v9 = vld [vmem:[#allocation3 + $0x28] sm:$0xff]  ;;  %v757_v10 = vunpack.c.l.bf16 %v1877_v3  ;;  %v758_v11 = vunpack.c.h.bf16 %v1877_v3  ;;  %v753_v12 = vunpack.c.l.bf16 %v1883_v8  ;;  %v754_v13 = vunpack.c.h.bf16 %v1883_v8  ;;  %v1891_v14 = vld [vmem:[#allocation3 + $0x20] sm:$0xff]  ;;  %s1432_s1 = sshll.u32 %s1816_s0, 4  ;;  %s1433_s1 = int_to_ptr.vmem [resolvable:$true] %s1432_s1 }
  0x20   :  { %82 = vst.msk [vmem:[#allocation2 + $0x20] sm:$0xff] %vm77_vm0, %v1814_v0  ;;  %83 = vst.msk [vmem:[#allocation2 + $0x28] sm:$0xff] %vm77_vm0, %v1814_v0  ;;  %v821_v15 = vadd.f32 %v756_v5, %v755_v4  ;;  %v815_v16 = vadd.f32 %v752_v7, %v751_v6  ;;  %v761_v17 = vunpack.c.l.bf16 %v1885_v9  ;;  %v762_v18 = vunpack.c.h.bf16 %v1885_v9  ;;  %v1632_v19 = vld [vmem:[#allocation6 + $0x78] sm:$0xff]   ;;  %v1899_v25 = vld [vmem:[#allocation3 + $0x30] sm:$0xff]  ;;  %s1782_s23 = scalar_lea.vmem %s1433_s1, 4096  ;;  %p1787_p11 = scmp.lt.s32.totalorder %s1433_s1, %s1433_s1 }
  0x21   :  { %84 = vst.msk [vmem:[#allocation2 + $0x30] sm:$0xff] %vm77_vm0, %v1814_v0  ;;  %85 = vst.msk [vmem:[#allocation2 + $0x38] sm:$0xff] %vm77_vm0, %v1814_v0  ;;  %v824_v20 = vadd.f32 %v758_v11, %v757_v10  ;;  %v818_v21 = vadd.f32 %v754_v13, %v753_v12  ;;  %v759_v22 = vunpack.c.l.bf16 %v1891_v14  ;;  %v760_v23 = vunpack.c.h.bf16 %v1891_v14  ;;  %v1897_v24 = vld [vmem:[#allocation3 + $0x38] sm:$0xff]  ;;  %1493 = vmatprep.subr.bf16.mxu0 %v1632_v19  ;;  %v1634_v27 = vld [vmem:[#allocation6 + $0x70] sm:$0xff]   ;;  %p1783_p10 = scmp.ne.s32.totalorder %s1433_s1, %s1782_s23  ;;  %p1788_p12 = scmp.lt.s32.totalorder %s1782_s23, %s1782_s23 }
  0x22   :  { %86 = vst.msk [vmem:[#allocation2 + $0x40] sm:$0xff] %vm77_vm0, %v1814_v0  ;;  %87 = vst.msk [vmem:[#allocation2 + $0x48] sm:$0xff] %vm77_vm0, %v1814_v0  ;;  %822 = vadd.xlane.f32.xlu1 %v821_v15  ;;  %816 = vadd.xlane.f32.xlu0 %v815_v16  ;;  %v1633_v26 = vld [vmem:[#allocation6 + $0x38] sm:$0xff]   ;;  %v1635_v28 = vld [vmem:[#allocation6 + $0x30] sm:$0xff]   ;;  %v830_v29 = vadd.f32 %v762_v18, %v761_v17  ;;  %v765_v30 = vunpack.c.l.bf16 %v1897_v24  ;;  %v766_v33 = vunpack.c.h.bf16 %v1897_v24  ;;  %v763_v34 = vunpack.c.l.bf16 %v1899_v25 }
  0x23   :  { %88 = vst.msk [vmem:[#allocation2 + $0x50] sm:$0xff] %vm77_vm0, %v1814_v0  ;;  %89 = vst.msk [vmem:[#allocation2 + $0x58] sm:$0xff] %vm77_vm0, %v1814_v0  ;;  %1605 = vmatprep.subr.bf16.mxu1 %v1632_v19  ;;  %1494 = vmatpush3.bf16.msra.mxu0 %v1633_v26  ;;  %v1902_v31 = vld [vmem:[#allocation3 + $0x48] sm:$0xff]  ;;  %v827_v32 = vadd.f32 %v760_v23, %v759_v22  ;;  %v764_v35 = vunpack.c.h.bf16 %v1899_v25  ;;  %v1907_v37 = vld [vmem:[#allocation3 + $0x40] sm:$0xff]  ;;  %v1446_v42 = vcombine.high %v1875_v2, %v1883_v8  ;;  %p1789_p13 = por %p1788_p12, %p1787_p11 }
  0x24   :  { %90 = vst.msk [vmem:[#allocation2 + $0x60] sm:$0xff] %vm77_vm0, %v1814_v0  ;;  %91 = vst.msk [vmem:[#allocation2 + $0x68] sm:$0xff] %vm77_vm0, %v1814_v0  ;;  %1613 = vmatpush3.bf16.msra.mxu1 %v1633_v26  ;;  %1495 = vmatprep.subr.bf16.mxu0 %v1634_v27  ;;  %v1636_v36 = vld [vmem:[#allocation6 + $0x68] sm:$0xff]   ;;  %v769_v39 = vunpack.c.l.bf16 %v1902_v31  ;;  %v770_v40 = vunpack.c.h.bf16 %v1902_v31  ;;  %v1638_v41 = vld [vmem:[#allocation6 + $0x60] sm:$0xff]   ;;  %v836_v43 = vadd.f32 %v766_v33, %v765_v30  ;;  %v767_v45 = vunpack.c.l.bf16 %v1907_v37 }
  0x25   :  { %92 = vst.msk [vmem:[#allocation2 + $0x70] sm:$0xff] %vm77_vm0, %v1814_v0  ;;  %93 = vst.msk [vmem:[#allocation2 + $0x78] sm:$0xff] %vm77_vm0, %v1814_v0  ;;  %1606 = vmatprep.subr.bf16.mxu1 %v1634_v27  ;;  %v1637_v38 = vld [vmem:[#allocation6 + $0x28] sm:$0xff]   ;;  %v833_v44 = vadd.f32 %v764_v35, %v763_v34  ;;  %v768_v46 = vunpack.c.h.bf16 %v1907_v37  ;;  %v1915_v47 = vld [vmem:[#allocation3 + $0x58] sm:$0xff]  ;;  %494 = vmatprep.mubr.bf16.mxu0 %v1446_v42  ;;  %p1790_p0 = pnand %p1789_p13, %p1783_p10 }
  0x26   :  { %94 = vst.msk [vmem:[#allocation2 + $0x80] sm:$0xff] %vm77_vm0, %v1814_v0  ;;  %95 = vst.msk [vmem:[#allocation2 + $0x88] sm:$0xff] %vm77_vm0, %v1814_v0  ;;  %825 = vadd.xlane.f32.xlu1 %v824_v20  ;;  %819 = vadd.xlane.f32.xlu0 %v818_v21  ;;  %v1917_v48 = vld [vmem:[#allocation3 + $0x50] sm:$0xff]  ;;  %v1919_v49 = vld [vmem:[#allocation3 + $0x68] sm:$0xff]  ;;  %v842_v51 = vadd.f32 %v770_v40, %v769_v39  ;;  %v773_v52 = vunpack.c.l.bf16 %v1915_v47  ;;  %v774_v56 = vunpack.c.h.bf16 %v1915_v47 }
  0x27   :  { %96 = vst.msk [vmem:[#allocation2 + $0x90] sm:$0xff] %vm77_vm0, %v1814_v0  ;;  %97 = vst.msk [vmem:[#allocation2 + $0x98] sm:$0xff] %vm77_vm0, %v1814_v0  ;;  %1496 = vmatpush3.bf16.msra.mxu0 %v1635_v28  ;;  %v1639_v50 = vld [vmem:[#allocation6 + $0x20] sm:$0xff]   ;;  %v1922_v53 = vld [vmem:[#allocation3 + $0x88] sm:$0xff]  ;;  %v839_v55 = vadd.f32 %v768_v46, %v767_v45  ;;  %v771_v57 = vunpack.c.l.bf16 %v1917_v48  ;;  %v772_v58 = vunpack.c.h.bf16 %v1917_v48  ;;  %v777_v63 = vunpack.c.l.bf16 %v1919_v49 }
  0x28   :  { %98 = vst.msk [vmem:[#allocation2 + $0xa0] sm:$0xff] %vm77_vm0, %v1814_v0  ;;  %99 = vst.msk [vmem:[#allocation2 + $0xa8] sm:$0xff] %vm77_vm0, %v1814_v0  ;;  %1614 = vmatpush3.bf16.msra.mxu1 %v1635_v28  ;;  %1497 = vmatprep.subr.bf16.mxu0 %v1636_v36  ;;  %v1640_v54 = vld [vmem:[#allocation6 + $0x58] sm:$0xff]   ;;  %v1927_v59 = vld [vmem:[#allocation3 + $0x80] sm:$0xff]  ;;  %v848_v5 = vadd.f32 %v774_v56, %v773_v52  ;;  %v785_v28 = vunpack.c.l.bf16 %v1922_v53  ;;  %v1445_v45 = vcombine.low %v1875_v2, %v1883_v8 }
  0x29   :  { %100 = vst.msk [vmem:[#allocation2 + $0xb0] sm:$0xff] %vm77_vm0, %v1814_v0  ;;  %101 = vst.msk [vmem:[#allocation2 + $0xb8] sm:$0xff] %vm77_vm0, %v1814_v0  ;;  %1607 = vmatprep.subr.bf16.mxu1 %v1636_v36  ;;  %v1929_v60 = vld [vmem:[#allocation3 + $0x60] sm:$0xff]  ;;  %v1462_v61 = vcombine.high %v1927_v59, %v1922_v53  ;;  %v1641_v62 = vld [vmem:[#allocation6 + $0x18] sm:$0xff]   ;;  %v845_v6 = vadd.f32 %v772_v58, %v771_v57  ;;  %v783_v30 = vunpack.c.l.bf16 %v1927_v59 }
  0x2a   :  { %102 = vst.msk [vmem:[#allocation2 + $0xc0] sm:$0xff] %vm77_vm0, %v1814_v0  ;;  %103 = vst.msk [vmem:[#allocation2 + $0xc8] sm:$0xff] %vm77_vm0, %v1814_v0  ;;  %831 = vadd.xlane.f32.xlu1 %v830_v29  ;;  %828 = vadd.xlane.f32.xlu0 %v827_v32  ;;  %v1642_v4 = vld [vmem:[#allocation6 + $0x50] sm:$0xff]   ;;  %v775_v7 = vunpack.c.l.bf16 %v1929_v60  ;;  %v776_v10 = vunpack.c.h.bf16 %v1929_v60  ;;  %v1937_v11 = vld [vmem:[#allocation3 + $0x78] sm:$0xff]  ;;  %v786_v29 = vunpack.c.h.bf16 %v1922_v53  ;;  %v784_v32 = vunpack.c.h.bf16 %v1927_v59 }
  0x2b   :  { %104 = vst.msk [vmem:[#allocation2 + $0xd0] sm:$0xff] %vm77_vm0, %v1814_v0  ;;  %105 = vst.msk [vmem:[#allocation2 + $0xd8] sm:$0xff] %vm77_vm0, %v1814_v0  ;;  %1498 = vmatpush3.bf16.msra.mxu0 %v1637_v38  ;;  %v1939_v12 = vld [vmem:[#allocation3 + $0x70] sm:$0xff]  ;;  %558 = vmatprep.mubr.bf16.mxu1 %v1462_v61  ;;  %v781_v15 = vunpack.c.l.bf16 %v1937_v11  ;;  %v782_v16 = vunpack.c.h.bf16 %v1937_v11  ;;  %v1644_v19 = vld [vmem:[#allocation6 + $0x48] sm:$0xff]   ;;  %v1461_v46 = vcombine.low %v1927_v59, %v1922_v53 }
  0x2c   :  { %106 = vst.msk [vmem:[#allocation2 + $0xe0] sm:$0xff] %vm77_vm0, %v1814_v0  ;;  %107 = vst.msk [vmem:[#allocation2 + $0xe8] sm:$0xff] %vm77_vm0, %v1814_v0  ;;  %1615 = vmatpush3.bf16.msra.mxu1 %v1637_v38  ;;  %1499 = vmatprep.subr.bf16.mxu0 %v1638_v41  ;;  %v1643_v13 = vld [vmem:[#allocation6 + $0x10] sm:$0xff]   ;;  %v779_v17 = vunpack.c.l.bf16 %v1939_v12  ;;  %v780_v18 = vunpack.c.h.bf16 %v1939_v12  ;;  %v851_v21 = vadd.f32 %v776_v10, %v775_v7  ;;  %v1645_v22 = vld [vmem:[#allocation6 + $0x8] sm:$0xff]   ;;  %v1815_v10 = vmov 0  }
  0x2d   :  { %108 = vst.msk [vmem:[#allocation2 + $0xf0] sm:$0xff] %vm77_vm0, %v1814_v0  ;;  %109 = vst.msk [vmem:[#allocation2 + $0xf8] sm:$0xff] %vm77_vm0, %v1814_v0  ;;  %1608 = vmatprep.subr.bf16.mxu1 %v1638_v41  ;;  %v778_v0 = vunpack.c.h.bf16 %v1919_v49  ;;  %v860_v23 = vadd.f32 %v782_v16, %v781_v15  ;;  %v1646_v27 = vld [vmem:[#allocation6 + $0x40] sm:$0xff]   ;;  %v1949_v33 = vld [vmem:[#allocation3 + $0x98] sm:$0xff]  ;;  %v866_v39 = vadd.f32 %v786_v29, %v785_v28  ;;  %1630 = vset.pattern.permute.xlu0 %v1815_v10 }
  0x2e   :  { %837 = vadd.xlane.f32.xlu1 %v836_v43  ;;  %834 = vadd.xlane.f32.xlu0 %v833_v44  ;;  %v857_v26 = vadd.f32 %v780_v18, %v779_v17  ;;  %v1951_v34 = vld [vmem:[#allocation3 + $0x90] sm:$0xff]  ;;  %v1647_v35 = vld [vmem:[#allocation6] sm:$0xff]   ;;  %v789_v36 = vunpack.c.l.bf16 %v1949_v33  ;;  %v790_v38 = vunpack.c.h.bf16 %v1949_v33  ;;  %v863_v40 = vadd.f32 %v784_v32, %v783_v30  ;;  %v1957_v43 = vld [vmem:[#allocation3 + $0xa8] sm:$0xff] }
  0x2f   :  { %1500 = vmatpush3.bf16.msra.mxu0 %v1639_v50  ;;  %v854_v20 = vadd.f32 %v778_v0, %v777_v63  ;;  %v787_v41 = vunpack.c.l.bf16 %v1951_v34  ;;  %v788_v42 = vunpack.c.h.bf16 %v1951_v34  ;;  %v1959_v44 = vld [vmem:[#allocation3 + $0xa0] sm:$0xff]  ;;  %v794_v2 = vunpack.c.h.bf16 %v1957_v43  ;;  %v1975_v57 = vld [vmem:[#allocation3 + $0xb0] sm:$0xff]  ;;  %1631 = vset.pattern.permute.xlu1 %v1815_v10  ;;  %v2005_v30 = vld [vmem:[#allocation3 + $0xe8] sm:$0xff] }
  0x30   :  { %1616 = vmatpush3.bf16.msra.mxu1 %v1639_v50  ;;  %1501 = vmatprep.subr.bf16.mxu0 %v1640_v54  ;;  %v1448_v50 = vcombine.high %v1873_v1, %v1877_v3  ;;  %v872_v52 = vadd.f32 %v790_v38, %v789_v36  ;;  %v791_v8 = vunpack.c.l.bf16 %v1959_v44  ;;  %v792_v53 = vunpack.c.h.bf16 %v1959_v44  ;;  %v747_v32 = vld [vmem:[#allocation3 + $0xe0] sm:$0xff] }
  0x31   :  { %1609 = vmatprep.subr.bf16.mxu1 %v1640_v54  ;;  %v793_v54 = vunpack.c.l.bf16 %v1957_v43  ;;  %v869_v56 = vadd.f32 %v788_v42, %v787_v41  ;;  %v795_v61 = vunpack.c.l.bf16 %v1975_v57  ;;  %v1463_v7 = vcombine.low %v1951_v34, %v1949_v33 }
  0x32   :  { %843 = vadd.xlane.f32.xlu1 %v842_v51  ;;  %840 = vadd.xlane.f32.xlu0 %v839_v55  ;;  %v1464_v51 = vcombine.high %v1951_v34, %v1949_v33  ;;  %v1970_v55 = vld [vmem:[#allocation3 + $0xb8] sm:$0xff]  ;;  %v875_v0 = vadd.f32 %v792_v53, %v791_v8  ;;  %v1466_v15 = vcombine.high %v1959_v44, %v1957_v43  ;;  %v809_v38 = vunpack.c.l.bf16 %v2005_v30 }
  0x33   :  { %1502 = vmatpush3.bf16.msra.mxu0 %v1641_v62  ;;  %v797_v58 = vunpack.c.l.bf16 %v1970_v55  ;;  %v798_v59 = vunpack.c.h.bf16 %v1970_v55  ;;  %v878_v63 = vadd.f32 %v794_v2, %v793_v54  ;;  %v1449_v33 = vcombine.low %v1891_v14, %v1885_v9 }
  0x34   :  { %1617 = vmatpush3.bf16.msra.mxu1 %v1641_v62  ;;  %1503 = vmatprep.subr.bf16.mxu0 %v1642_v4  ;;  %v796_v62 = vunpack.c.h.bf16 %v1975_v57  ;;  %v1465_v34 = vcombine.low %v1959_v44, %v1957_v43  ;;  %v1468_v36 = vcombine.high %v1975_v57, %v1970_v55  ;;  %v807_v42 = vunpack.c.l.bf16 %v747_v32 }
  0x35   :  { %1610 = vmatprep.subr.bf16.mxu1 %v1642_v4  ;;  %v1981_v4 = vld [vmem:[#allocation3 + $0xc8] sm:$0xff]  ;;  %v884_v16 = vadd.f32 %v798_v59, %v797_v58  ;;  %v1451_v54 = vcombine.low %v1899_v25, %v1897_v24  ;;  %v1454_v2 = vcombine.high %v1907_v37, %v1902_v31  ;;  %v1455_v59 = vcombine.low %v1917_v48, %v1915_v47 }
  0x36   :  { %849 = vadd.xlane.f32.xlu1 %v848_v5  ;;  %846 = vadd.xlane.f32.xlu0 %v845_v6  ;;  %v1983_v5 = vld [vmem:[#allocation3 + $0xc0] sm:$0xff]  ;;  %v1447_v6 = vcombine.low %v1873_v1, %v1877_v3  ;;  %v881_v17 = vadd.f32 %v796_v62, %v795_v61  ;;  %v801_v18 = vunpack.c.l.bf16 %v1981_v4  ;;  %v802_v1 = vunpack.c.h.bf16 %v1981_v4 }
  0x37   :  { %1504 = vmatpush3.bf16.msra.mxu0 %v1643_v13  ;;  %v799_v3 = vunpack.c.l.bf16 %v1983_v5  ;;  %v1470_v8 = vcombine.high %v1983_v5, %v1981_v4  ;;  %v1457_v62 = vcombine.low %v1929_v60, %v1919_v49 }
  0x38   :  { %1618 = vmatpush3.bf16.msra.mxu1 %v1643_v13  ;;  %1505 = vmatprep.subr.bf16.mxu0 %v1644_v19  ;;  %v1450_v13 = vcombine.high %v1891_v14, %v1885_v9  ;;  %v750_v9 = vld [vmem:[#allocation3 + $0xf8] sm:$0xff]  ;;  %v749_v14 = vld [vmem:[#allocation3 + $0xf0] sm:$0xff] }
  0x39   :  { %1611 = vmatprep.subr.bf16.mxu1 %v1644_v19  ;;  %v800_v19 = vunpack.c.h.bf16 %v1983_v5  ;;  %v813_v44 = vunpack.c.l.bf16 %v750_v9 }
  0x3a   :  { %855 = vadd.xlane.f32.xlu1 %v854_v20  ;;  %852 = vadd.xlane.f32.xlu0 %v851_v21  ;;  %v1997_v20 = vld [vmem:[#allocation3 + $0xd8] sm:$0xff]  ;;  %v1999_v21 = vld [vmem:[#allocation3 + $0xd0] sm:$0xff] }
  0x3b   :  { %1506 = vmatpush3.bf16.msra.mxu0 %v1645_v22  ;;  %v803_v28 = vunpack.c.l.bf16 %v1999_v21  ;;  %v804_v29 = vunpack.c.h.bf16 %v1999_v21  ;;  %v1471_v61 = vcombine.low %v1999_v21, %v1997_v20 }
  0x3c   :  { %1619 = vmatpush3.bf16.msra.mxu1 %v1645_v22  ;;  %1507 = vmatprep.subr.bf16.mxu0 %v1646_v27  ;;  %v805_v22 = vunpack.c.l.bf16 %v1997_v20 }
  0x3d   :  { %1612 = vmatprep.subr.bf16.mxu1 %v1646_v27  ;;  %v887_v27 = vadd.f32 %v800_v19, %v799_v3  ;;  %v893_v41 = vadd.f32 %v804_v29, %v803_v28 }
  0x3e   :  { %861 = vadd.xlane.f32.xlu1 %v860_v23  ;;  %858 = vadd.xlane.f32.xlu0 %v857_v26  ;;  %v806_v23 = vunpack.c.h.bf16 %v1997_v20  ;;  %v890_v26 = vadd.f32 %v802_v1, %v801_v18 }
  0x3f   :  { %1508 = vmatpush3.bf16.msra.mxu0 %v1647_v35 }
  0x40   :  { %1620 = vmatpush3.bf16.msra.mxu1 %v1647_v35  ;;  %v1452_v35 = vcombine.high %v1899_v25, %v1897_v24  ;;  %v1453_v24 = vcombine.low %v1907_v37, %v1902_v31  ;;  %v1469_v25 = vcombine.low %v1983_v5, %v1981_v4  ;;  %v1458_v31 = vcombine.high %v1929_v60, %v1919_v49  ;;  %v689_v5 = vld [vmem:[#allocation2 + $0x10] sm:$0xff] }
  0x41   :  { %v1474_v37 = vcombine.high %v747_v32, %v2005_v30  ;;  %v1475_v4 = vcombine.low %v749_v14, %v750_v9 }
  0x42   :  { %867 = vadd.xlane.f32.xlu1 %v866_v39  ;;  %864 = vadd.xlane.f32.xlu0 %v863_v40  ;;  %v810_v39 = vunpack.c.h.bf16 %v2005_v30  ;;  %v896_v40 = vadd.f32 %v806_v23, %v805_v22  ;;  %v694_v22 = vld [vmem:[#allocation2 + $0x38] sm:$0xff]  ;;  %v693_v23 = vld [vmem:[#allocation2 + $0x30] sm:$0xff] }
  0x43   :  { %495 = vmatmul.mubr.bf16.vlgmr.msra.gmra.mxu0 %v1445_v45  ;;  %559 = vmatmul.mubr.bf16.vlgmr.msra.gmra.mxu1 %v1461_v46  ;;  %v808_v45 = vunpack.c.h.bf16 %v747_v32 }
  0x44   :  { %502 = vmatprep.mubr.bf16.mxu0 %v1448_v50  ;;  %566 = vmatprep.mubr.bf16.mxu1 %v1464_v51  ;;  %v902_v43 = vadd.f32 %v810_v39, %v809_v38  ;;  %v814_v50 = vunpack.c.h.bf16 %v750_v9  ;;  %v811_v51 = vunpack.c.l.bf16 %v749_v14 }
  0x45   :  { %v899_v46 = vadd.f32 %v808_v45, %v807_v42 }
  0x46   :  { %873 = vadd.xlane.f32.xlu1 %v872_v52  ;;  %870 = vadd.xlane.f32.xlu0 %v869_v56  ;;  %v812_v52 = vunpack.c.h.bf16 %v749_v14  ;;  %v1467_v56 = vcombine.low %v1975_v57, %v1970_v55  ;;  %v908_v53 = vadd.f32 %v814_v50, %v813_v44  ;;  %v1456_v55 = vcombine.high %v1917_v48, %v1915_v47 }
  0x47   :  { %v1472_v57 = vcombine.high %v1999_v21, %v1997_v20  ;;  %v1460_v47 = vcombine.high %v1939_v12, %v1937_v11  ;;  %v1476_v48 = vcombine.high %v749_v14, %v750_v9  ;;  %v698_v14 = vld [vmem:[#allocation2 + $0x58] sm:$0xff] }
  0x48   :  { %v905_v58 = vadd.f32 %v812_v52, %v811_v51 }
  0x4a   :  { %879 = vadd.xlane.f32.xlu1 %v878_v63  ;;  %876 = vadd.xlane.f32.xlu0 %v875_v0  ;;  %v1473_v63 = vcombine.low %v747_v32, %v2005_v30  ;;  %v1459_v0 = vcombine.low %v1939_v12, %v1937_v11  ;;  %v692_v11 = vld [vmem:[#allocation2 + $0x28] sm:$0xff]  ;;  %v691_v12 = vld [vmem:[#allocation2 + $0x20] sm:$0xff] }
  0x4b   :  { %503 = vmatmul.mubr.bf16.gmra.mxu0 %v1447_v6  ;;  %567 = vmatmul.mubr.bf16.gmra.mxu1 %v1463_v7  ;;  %v687_v6 = vld [vmem:[#allocation2] sm:$0xff] }
  0x4c   :  { %510 = vmatprep.mubr.bf16.mxu0 %v1450_v13  ;;  %574 = vmatprep.mubr.bf16.mxu1 %v1466_v15  ;;  %v690_v13 = vld [vmem:[#allocation2 + $0x18] sm:$0xff]  ;;  %v688_v15 = vld [vmem:[#allocation2 + $0x8] sm:$0xff] }
  0x4e   :  { %885 = vadd.xlane.f32.xlu1 %v884_v16  ;;  %882 = vadd.xlane.f32.xlu0 %v881_v17 }
  0x52   :  { %891 = vadd.xlane.f32.xlu1 %v890_v26  ;;  %888 = vadd.xlane.f32.xlu0 %v887_v27 }
  0x53   :  { %511 = vmatmul.mubr.bf16.gmra.mxu0 %v1449_v33  ;;  %575 = vmatmul.mubr.bf16.gmra.mxu1 %v1465_v34  ;;  %v696_v34 = vld [vmem:[#allocation2 + $0x48] sm:$0xff] }
  0x54   :  { %518 = vmatprep.mubr.bf16.mxu0 %v1452_v35  ;;  %582 = vmatprep.mubr.bf16.mxu1 %v1468_v36  ;;  %v695_v35 = vld [vmem:[#allocation2 + $0x40] sm:$0xff] }
  0x56   :  { %897 = vadd.xlane.f32.xlu1 %v896_v40  ;;  %894 = vadd.xlane.f32.xlu0 %v893_v41 }
  0x5a   :  { %903 = vadd.xlane.f32.xlu1 %v902_v43  ;;  %900 = vadd.xlane.f32.xlu0 %v899_v46  ;;  %v697_v43 = vld [vmem:[#allocation2 + $0x50] sm:$0xff] }
  0x5b   :  { %519 = vmatmul.mubr.bf16.gmra.mxu0 %v1451_v54  ;;  %583 = vmatmul.mubr.bf16.gmra.mxu1 %v1467_v56  ;;  %v700_v56 = vld [vmem:[#allocation2 + $0x68] sm:$0xff] }
  0x5c   :  { %526 = vmatprep.mubr.bf16.mxu0 %v1454_v2  ;;  %590 = vmatprep.mubr.bf16.mxu1 %v1470_v8  ;;  %v699_v2 = vld [vmem:[#allocation2 + $0x60] sm:$0xff] }
  0x5e   :  { %909 = vadd.xlane.f32.xlu1 %v908_v53  ;;  %906 = vadd.xlane.f32.xlu0 %v905_v58 }
  0x63   :  { %527 = vmatmul.mubr.bf16.gmra.mxu0 %v1453_v24  ;;  %591 = vmatmul.mubr.bf16.gmra.mxu1 %v1469_v25 }
  0x64   :  { %534 = vmatprep.mubr.bf16.mxu0 %v1456_v55  ;;  %598 = vmatprep.mubr.bf16.mxu1 %v1472_v57 }
  0x6b   :  { %535 = vmatmul.mubr.bf16.gmra.mxu0 %v1455_v59  ;;  %599 = vmatmul.mubr.bf16.gmra.mxu1 %v1471_v61  ;;  %v702_v59 = vld [vmem:[#allocation2 + $0x78] sm:$0xff]  ;;  %v701_v61 = vld [vmem:[#allocation2 + $0x70] sm:$0xff] }
  0x6c   :  { %542 = vmatprep.mubr.bf16.mxu0 %v1458_v31  ;;  %606 = vmatprep.mubr.bf16.mxu1 %v1474_v37 }
  0x73   :  { %543 = vmatmul.mubr.bf16.gmra.mxu0 %v1457_v62  ;;  %607 = vmatmul.mubr.bf16.gmra.mxu1 %v1473_v63 }
  0x74   :  { %550 = vmatprep.mubr.bf16.mxu0 %v1460_v47  ;;  %614 = vmatprep.mubr.bf16.mxu1 %v1476_v48 }
  0x7b   :  { %551 = vmatmul.mubr.bf16.gmra.mxu0 %v1459_v0  ;;  %615 = vmatmul.mubr.bf16.gmra.mxu1 %v1475_v4 }
  0xab   :  { %v823_v7 = vpop.xlane.xlu1 %822  ;;  %v817_v49 = vpop.xlane.xlu0 %816 }
  0xac   :  { %v913_v60 = vadd.f32 %v823_v7, %v689_v5  ;;  %v911_v10 = vadd.f32 %v817_v49, %v687_v6  ;;  %v704_v7 = vld [vmem:[#allocation2 + $0x88] sm:$0xff]  ;;  %v703_v49 = vld [vmem:[#allocation2 + $0x80] sm:$0xff] }
  0xae   :  { %946 = vst.msk [vmem:[#allocation2 + $0x10] sm:$0xff] %vm77_vm0, %v913_v60  ;;  %944 = vst.msk [vmem:[#allocation2] sm:$0xff] %vm77_vm0, %v911_v10 }
  0xaf   :  { %v826_v16 = vpop.xlane.xlu1 %825  ;;  %v820_v17 = vpop.xlane.xlu0 %819 }
  0xb0   :  { %v914_v18 = vadd.f32 %v826_v16, %v690_v13  ;;  %v912_v1 = vadd.f32 %v820_v17, %v688_v15 }
  0xb2   :  { %947 = vst.msk [vmem:[#allocation2 + $0x18] sm:$0xff] %vm77_vm0, %v914_v18  ;;  %945 = vst.msk [vmem:[#allocation2 + $0x8] sm:$0xff] %vm77_vm0, %v912_v1 }
  0xb3   :  { %v832_v3 = vpop.xlane.xlu1 %831  ;;  %v829_v19 = vpop.xlane.xlu0 %828 }
  0xb4   :  { %v916_v20 = vadd.f32 %v832_v3, %v692_v11  ;;  %v915_v21 = vadd.f32 %v829_v19, %v691_v12  ;;  %v706_v3 = vld [vmem:[#allocation2 + $0x98] sm:$0xff]  ;;  %v705_v19 = vld [vmem:[#allocation2 + $0x90] sm:$0xff] }
  0xb5   :  { %v979_v26 = vld [vmem:[#allocation2] sm:$0xff]  ;;  %v2053_v30 = vld [vmem:[#allocation2 + $0x10] sm:$0xff] }
  0xb6   :  { %949 = vst.msk [vmem:[#allocation2 + $0x28] sm:$0xff] %vm77_vm0, %v916_v20  ;;  %948 = vst.msk [vmem:[#allocation2 + $0x20] sm:$0xff] %vm77_vm0, %v915_v21  ;;  %v1043_v27 = vmax.f32 %v979_v26, 1.0  ;;  %v1045_v39 = vmax.f32 %v2053_v30, 1.0  ;;  %vm1011_vm1 = vcmp.gt.f32.partialorder %v979_v26, 0.0  ;;  %vm1013_vm3 = vcmp.gt.f32.partialorder %v2053_v30, 0.0 }
  0xb7   :  { %v838_v28 = vpop.xlane.xlu1 %837  ;;  %v835_v29 = vpop.xlane.xlu0 %834 }
  0xb8   :  { %v918_v32 = vadd.f32 %v838_v28, %v694_v22  ;;  %v917_v33 = vadd.f32 %v835_v29, %v693_v23  ;;  %1678 = vrcp.f32 %v1043_v27 }
  0xb9   :  { %v980_v36 = vld [vmem:[#allocation2 + $0x8] sm:$0xff]  ;;  %v2058_v42 = vld [vmem:[#allocation2 + $0x18] sm:$0xff] }
  0xba   :  { %951 = vst.msk [vmem:[#allocation2 + $0x38] sm:$0xff] %vm77_vm0, %v918_v32  ;;  %950 = vst.msk [vmem:[#allocation2 + $0x30] sm:$0xff] %vm77_vm0, %v917_v33  ;;  %v1044_v38 = vmax.f32 %v980_v36, 1.0  ;;  %v1046_v44 = vmax.f32 %v2058_v42, 1.0  ;;  %vm1012_vm2 = vcmp.gt.f32.partialorder %v980_v36, 0.0  ;;  %v708_v33 = vld [vmem:[#allocation2 + $0xa8] sm:$0xff] }
  0xbb   :  { %v844_v40 = vpop.xlane.xlu1 %843  ;;  %v841_v41 = vpop.xlane.xlu0 %840  ;;  %vm1014_vm4 = vcmp.gt.f32.partialorder %v2058_v42, 0.0 }
  0xbc   :  { %v920_v45 = vadd.f32 %v844_v40, %v696_v34  ;;  %v919_v9 = vadd.f32 %v841_v41, %v695_v35  ;;  %1680 = vrcp.f32 %v1044_v38  ;;  %v707_v34 = vld [vmem:[#allocation2 + $0xa0] sm:$0xff] }
  0xbd   :  { %1682 = vrcp.f32 %v1045_v39  ;;  %v2063_v51 = vld [vmem:[#allocation2 + $0x20] sm:$0xff]  ;;  %v2068_v24 = vld [vmem:[#allocation2 + $0x28] sm:$0xff] }
  0xbe   :  { %953 = vst.msk [vmem:[#allocation2 + $0x48] sm:$0xff] %vm77_vm0, %v920_v45  ;;  %952 = vst.msk [vmem:[#allocation2 + $0x40] sm:$0xff] %vm77_vm0, %v919_v9  ;;  %1684 = vrcp.f32 %v1046_v44  ;;  %v1047_v8 = vmax.f32 %v2063_v51, 1.0  ;;  %v1048_v63 = vmax.f32 %v2068_v24, 1.0  ;;  %v710_v44 = vld [vmem:[#allocation2 + $0xb8] sm:$0xff]  ;;  %vm1015_vm6 = vcmp.gt.f32.partialorder %v2063_v51, 0.0 }
  0xbf   :  { %v850_v46 = vpop.xlane.xlu1 %849  ;;  %v847_v50 = vpop.xlane.xlu0 %846  ;;  %vm1016_vm8 = vcmp.gt.f32.partialorder %v2068_v24, 0.0 }
  0xc0   :  { %v922_v52 = vadd.f32 %v850_v46, %v698_v14  ;;  %v921_v54 = vadd.f32 %v847_v50, %v697_v43  ;;  %1686 = vrcp.f32 %v1047_v8  ;;  %v709_v46 = vld [vmem:[#allocation2 + $0xb0] sm:$0xff] }
  0xc1   :  { %v2076_v0 = vld [vmem:[#allocation2 + $0x30] sm:$0xff]  ;;  %v2084_v1 = vld [vmem:[#allocation2 + $0x38] sm:$0xff] }
  0xc2   :  { %955 = vst.msk [vmem:[#allocation2 + $0x58] sm:$0xff] %vm77_vm0, %v922_v52  ;;  %954 = vst.msk [vmem:[#allocation2 + $0x50] sm:$0xff] %vm77_vm0, %v921_v54  ;;  %v1049_v15 = vmax.f32 %v2076_v0, 1.0  ;;  %v1050_v23 = vmax.f32 %v2084_v1, 1.0  ;;  %vm1017_vm10 = vcmp.gt.f32.partialorder %v2076_v0, 0.0  ;;  %vm1018_vm11 = vcmp.gt.f32.partialorder %v2084_v1, 0.0 }
  0xc3   :  { %v856_v53 = vpop.xlane.xlu1 %855  ;;  %v853_v58 = vpop.xlane.xlu0 %852 }
  0xc4   :  { %v924_v25 = vadd.f32 %v856_v53, %v700_v56  ;;  %v923_v55 = vadd.f32 %v853_v58, %v699_v2 }
  0xc5   :  { %v1679_v57 = vpop.eup %1678  ;;  %v2070_v31 = vld [vmem:[#allocation2 + $0x48] sm:$0xff]  ;;  %v2093_v26 = vld [vmem:[#allocation2 + $0x40] sm:$0xff] }
  0xc6   :  { %957 = vst.msk [vmem:[#allocation2 + $0x68] sm:$0xff] %vm77_vm0, %v924_v25  ;;  %956 = vst.msk [vmem:[#allocation2 + $0x60] sm:$0xff] %vm77_vm0, %v923_v55  ;;  %v1139_v37 = vsel %vm1011_vm1, %v1679_v57, 0.0  ;;  %v1052_v62 = vmax.f32 %v2070_v31, 1.0  ;;  %v1051_v36 = vmax.f32 %v2093_v26, 1.0  ;;  %vm1020_vm5 = vcmp.gt.f32.partialorder %v2070_v31, 0.0 }
  0xc7   :  { %v862_v47 = vpop.xlane.xlu1 %861  ;;  %1205 = vperm.xlu0 %1630, %v1139_v37   ;;  %v859_v48 = vpop.xlane.xlu0 %858  ;;  %vm1019_vm13 = vcmp.gt.f32.partialorder %v2093_v26, 0.0 }
  0xc8   :  { %v926_v4 = vadd.f32 %v862_v47, %v702_v59  ;;  %v925_v5 = vadd.f32 %v859_v48, %v701_v61  ;;  %1688 = vrcp.f32 %v1052_v62  ;;  %v712_v59 = vld [vmem:[#allocation2 + $0xc8] sm:$0xff]  ;;  %v711_v61 = vld [vmem:[#allocation2 + $0xc0] sm:$0xff] }
  0xc9   :  { %v1681_v6 = vpop.eup %1680  ;;  %v2078_v60 = vld [vmem:[#allocation2 + $0x58] sm:$0xff]  ;;  %1690 = vrcp.f32 %v1048_v63  ;;  %v2102_v40 = vld [vmem:[#allocation2 + $0x50] sm:$0xff] }
  0xca   :  { %959 = vst.msk [vmem:[#allocation2 + $0x78] sm:$0xff] %vm77_vm0, %v926_v4  ;;  %958 = vst.msk [vmem:[#allocation2 + $0x70] sm:$0xff] %vm77_vm0, %v925_v5  ;;  %v1140_v10 = vsel %vm1012_vm2, %v1681_v6, 0.0  ;;  %v1054_v13 = vmax.f32 %v2078_v60, 1.0  ;;  %v1683_v16 = vpop.eup %1682  ;;  %v1053_v52 = vmax.f32 %v2102_v40, 1.0  ;;  %vm1022_vm7 = vcmp.gt.f32.partialorder %v2078_v60, 0.0 }
  0xcb   :  { %v868_v17 = vpop.xlane.xlu1 %867  ;;  %1210 = vperm.xlu1 %1631, %v1140_v10   ;;  %v865_v18 = vpop.xlane.xlu0 %864  ;;  %v1141_v21 = vsel %vm1013_vm3, %v1683_v16, 0.0  ;;  %v714_v60 = vld [vmem:[#allocation2 + $0xd8] sm:$0xff]  ;;  %v713_v10 = vld [vmem:[#allocation2 + $0xd0] sm:$0xff]  ;;  %vm1021_vm15 = vcmp.gt.f32.partialorder %v2102_v40, 0.0 }
  0xcc   :  { %v928_v11 = vadd.f32 %v868_v17, %v704_v7  ;;  %v927_v12 = vadd.f32 %v865_v18, %v703_v49  ;;  %1692 = vrcp.f32 %v1054_v13  ;;  %v1685_v27 = vpop.eup %1684 }
  0xcd   :  { %v2087_v20 = vld [vmem:[#allocation2 + $0x68] sm:$0xff]  ;;  %1694 = vrcp.f32 %v1049_v15  ;;  %v1142_v38 = vsel %vm1014_vm4, %v1685_v27, 0.0  ;;  %v1687_v41 = vpop.eup %1686  ;;  %v2112_v8 = vld [vmem:[#allocation2 + $0x60] sm:$0xff] }
  0xce   :  { %961 = vst.msk [vmem:[#allocation2 + $0x88] sm:$0xff] %vm77_vm0, %v928_v11  ;;  %960 = vst.msk [vmem:[#allocation2 + $0x80] sm:$0xff] %vm77_vm0, %v927_v12  ;;  %v1056_v22 = vmax.f32 %v2087_v20, 1.0  ;;  %v1143_v54 = vsel %vm1015_vm6, %v1687_v41, 0.0  ;;  %v1055_v37 = vmax.f32 %v2112_v8, 1.0  ;;  %vm1024_vm9 = vcmp.gt.f32.partialorder %v2087_v20, 0.0 }
  0xcf   :  { %v874_v28 = vpop.xlane.xlu1 %873  ;;  %1215 = vperm.xlu1 %1631, %v1141_v21   ;;  %v871_v29 = vpop.xlane.xlu0 %870  ;;  %v718_v41 = vld [vmem:[#allocation2 + $0xf8] sm:$0xff]  ;;  %vm1023_vm2 = vcmp.gt.f32.partialorder %v2112_v8, 0.0 }
  0xd0   :  { %v930_v30 = vadd.f32 %v874_v28, %v706_v3  ;;  %v929_v32 = vadd.f32 %v871_v29, %v705_v19  ;;  %1696 = vrcp.f32 %v1056_v22  ;;  %v716_v22 = vld [vmem:[#allocation2 + $0xe8] sm:$0xff] }
  0xd1   :  { %v2096_v35 = vld [vmem:[#allocation2 + $0x78] sm:$0xff]  ;;  %1698 = vrcp.f32 %v1050_v23  ;;  %v2122_v48 = vld [vmem:[#allocation2 + $0x70] sm:$0xff]  ;;  %v715_v23 = vld [vmem:[#allocation2 + $0xe0] sm:$0xff] }
  0xd2   :  { %963 = vst.msk [vmem:[#allocation2 + $0x98] sm:$0xff] %vm77_vm0, %v930_v30  ;;  %962 = vst.msk [vmem:[#allocation2 + $0x90] sm:$0xff] %vm77_vm0, %v929_v32  ;;  %v1058_v39 = vmax.f32 %v2096_v35, 1.0  ;;  %v1057_v15 = vmax.f32 %v2122_v48, 1.0  ;;  %vm1026_vm12 = vcmp.gt.f32.partialorder %v2096_v35, 0.0  ;;  %vm1025_vm4 = vcmp.gt.f32.partialorder %v2122_v48, 0.0 }
  0xd3   :  { %v880_v45 = vpop.xlane.xlu1 %879  ;;  %1220 = vperm.xlu1 %1631, %v1142_v38   ;;  %v877_v9 = vpop.xlane.xlu0 %876 }
  0xd4   :  { %v932_v42 = vadd.f32 %v880_v45, %v708_v33  ;;  %v931_v14 = vadd.f32 %v877_v9, %v707_v34  ;;  %1700 = vrcp.f32 %v1058_v39  ;;  %v717_v9 = vld [vmem:[#allocation2 + $0xf0] sm:$0xff] }
  0xd5   :  { %v1689_v43 = vpop.eup %1688  ;;  %1702 = vrcp.f32 %v1051_v36  ;;  %v2106_v50 = vld [vmem:[#allocation2 + $0x88] sm:$0xff]  ;;  %v2134_v0 = vld [vmem:[#allocation2 + $0x80] sm:$0xff] }
  0xd6   :  { %965 = vst.msk [vmem:[#allocation2 + $0xa8] sm:$0xff] %vm77_vm0, %v932_v42  ;;  %964 = vst.msk [vmem:[#allocation2 + $0xa0] sm:$0xff] %vm77_vm0, %v931_v14  ;;  %v1148_v56 = vsel %vm1020_vm5, %v1689_v43, 0.0  ;;  %v1060_v2 = vmax.f32 %v2106_v50, 1.0  ;;  %v1691_v53 = vpop.eup %1690  ;;  %v1059_v32 = vmax.f32 %v2134_v0, 1.0  ;;  %vm1028_vm14 = vcmp.gt.f32.partialorder %v2106_v50, 0.0 }
  0xd7   :  { %v886_v58 = vpop.xlane.xlu1 %885  ;;  %1225 = vperm.xlu1 %1631, %v1143_v54   ;;  %1250 = vperm.xlu0 %1630, %v1148_v56   ;;  %v883_v51 = vpop.xlane.xlu0 %882  ;;  %v1144_v62 = vsel %vm1016_vm8, %v1691_v53, 0.0  ;;  %vm1027_vm5 = vcmp.gt.f32.partialorder %v2134_v0, 0.0 }
  0xd8   :  { %v934_v25 = vadd.f32 %v886_v58, %v710_v44  ;;  %v933_v55 = vadd.f32 %v883_v51, %v709_v46  ;;  %1704 = vrcp.f32 %v1060_v2 }
  0xd9   :  { %v1693_v57 = vpop.eup %1692  ;;  %1706 = vrcp.f32 %v1053_v52  ;;  %v2116_v31 = vld [vmem:[#allocation2 + $0x98] sm:$0xff]  ;;  %v2144_v35 = vld [vmem:[#allocation2 + $0x90] sm:$0xff] }
  0xda   :  { %967 = vst.msk [vmem:[#allocation2 + $0xb8] sm:$0xff] %vm77_vm0, %v934_v25  ;;  %966 = vst.msk [vmem:[#allocation2 + $0xb0] sm:$0xff] %vm77_vm0, %v933_v55  ;;  %v1150_v63 = vsel %vm1022_vm7, %v1693_v57, 0.0  ;;  %v1062_v47 = vmax.f32 %v2116_v31, 1.0  ;;  %v1695_v4 = vpop.eup %1694  ;;  %v1061_v46 = vmax.f32 %v2144_v35, 1.0  ;;  %vm1030_vm1 = vcmp.gt.f32.partialorder %v2116_v31, 0.0 }
  0xdb   :  { %v892_v5 = vpop.xlane.xlu1 %891  ;;  %1230 = vperm.xlu1 %1631, %v1144_v62   ;;  %1260 = vperm.xlu0 %1630, %v1150_v63   ;;  %v889_v24 = vpop.xlane.xlu0 %888  ;;  %v1145_v16 = vsel %vm1017_vm10, %v1695_v4, 0.0  ;;  %vm1029_vm7 = vcmp.gt.f32.partialorder %v2144_v35, 0.0 }
  0xdc   :  { %v936_v6 = vadd.f32 %v892_v5, %v712_v59  ;;  %v935_v7 = vadd.f32 %v889_v24, %v711_v61  ;;  %1708 = vrcp.f32 %v1062_v47 }
  0xdd   :  { %v1697_v49 = vpop.eup %1696  ;;  %1710 = vrcp.f32 %v1055_v37  ;;  %v2126_v13 = vld [vmem:[#allocation2 + $0xa8] sm:$0xff]  ;;  %v2156_v52 = vld [vmem:[#allocation2 + $0xa0] sm:$0xff] }
  0xde   :  { %969 = vst.msk [vmem:[#allocation2 + $0xc8] sm:$0xff] %vm77_vm0, %v936_v6  ;;  %968 = vst.msk [vmem:[#allocation2 + $0xc0] sm:$0xff] %vm77_vm0, %v935_v7  ;;  %v1152_v17 = vsel %vm1024_vm9, %v1697_v49, 0.0  ;;  %v1064_v18 = vmax.f32 %v2126_v13, 1.0  ;;  %v1699_v11 = vpop.eup %1698  ;;  %v1063_v57 = vmax.f32 %v2156_v52, 1.0  ;;  %vm1032_vm3 = vcmp.gt.f32.partialorder %v2126_v13, 0.0 }
  0xdf   :  { %v898_v12 = vpop.xlane.xlu1 %897  ;;  %1235 = vperm.xlu1 %1631, %v1145_v16   ;;  %1270 = vperm.xlu0 %1630, %v1152_v17   ;;  %v895_v3 = vpop.xlane.xlu0 %894  ;;  %v1146_v1 = vsel %vm1018_vm11, %v1699_v11, 0.0  ;;  %vm1031_vm9 = vcmp.gt.f32.partialorder %v2156_v52, 0.0 }
  0xe0   :  { %v938_v19 = vadd.f32 %v898_v12, %v714_v60  ;;  %v937_v20 = vadd.f32 %v895_v3, %v713_v10  ;;  %1712 = vrcp.f32 %v1064_v18 }
  0xe1   :  { %v1701_v21 = vpop.eup %1700  ;;  %1714 = vrcp.f32 %v1057_v15  ;;  %v2137_v27 = vld [vmem:[#allocation2 + $0xb8] sm:$0xff]  ;;  %v2165_v59 = vld [vmem:[#allocation2 + $0xb0] sm:$0xff] }
  0xe2   :  { %v1703_v28 = vpop.eup %1702  ;;  %971 = vst.msk [vmem:[#allocation2 + $0xd8] sm:$0xff] %vm77_vm0, %v938_v19  ;;  %970 = vst.msk [vmem:[#allocation2 + $0xd0] sm:$0xff] %vm77_vm0, %v937_v20  ;;  %v1154_v29 = vsel %vm1026_vm12, %v1701_v21, 0.0  ;;  %v1066_v30 = vmax.f32 %v2137_v27, 1.0  ;;  %v1065_v63 = vmax.f32 %v2165_v59, 1.0  ;;  %vm1033_vm11 = vcmp.gt.f32.partialorder %v2165_v59, 0.0 }
  0xe3   :  { %v904_v33 = vpop.xlane.xlu1 %903  ;;  %1240 = vperm.xlu1 %1631, %v1146_v1   ;;  %1280 = vperm.xlu0 %1630, %v1154_v29   ;;  %v901_v34 = vpop.xlane.xlu0 %900  ;;  %v1147_v45 = vsel %vm1019_vm13, %v1703_v28, 0.0 }
  0xe4   :  { %v940_v36 = vadd.f32 %v904_v33, %v716_v22  ;;  %v939_v38 = vadd.f32 %v901_v34, %v715_v23  ;;  %1716 = vrcp.f32 %v1066_v30 }
  0xe5   :  { %v1705_v39 = vpop.eup %1704  ;;  %v2149_v42 = vld [vmem:[#allocation2 + $0xc8] sm:$0xff]  ;;  %1718 = vrcp.f32 %v1059_v32  ;;  %v1003_v47 = vld [vmem:[#allocation2 + $0xc0] sm:$0xff] }
  0xe6   :  { %v1707_v14 = vpop.eup %1706  ;;  %973 = vst.msk [vmem:[#allocation2 + $0xe8] sm:$0xff] %vm77_vm0, %v940_v36  ;;  %972 = vst.msk [vmem:[#allocation2 + $0xe0] sm:$0xff] %vm77_vm0, %v939_v38  ;;  %v1156_v43 = vsel %vm1028_vm14, %v1705_v39, 0.0  ;;  %v1068_v44 = vmax.f32 %v2149_v42, 1.0  ;;  %v1067_v48 = vmax.f32 %v1003_v47, 1.0  ;;  %vm1036_vm6 = vcmp.gt.f32.partialorder %v2149_v42, 0.0 }
  0xe7   :  { %v910_v50 = vpop.xlane.xlu1 %909  ;;  %1245 = vperm.xlu1 %1631, %v1147_v45   ;;  %1290 = vperm.xlu0 %1630, %v1156_v43   ;;  %v907_v26 = vpop.xlane.xlu0 %906  ;;  %v1149_v53 = vsel %vm1021_vm15, %v1707_v14, 0.0  ;;  %vm1035_vm13 = vcmp.gt.f32.partialorder %v1003_v47, 0.0 }
  0xe8   :  { %v942_v54 = vadd.f32 %v910_v50, %v718_v41  ;;  %v941_v56 = vadd.f32 %v907_v26, %v717_v9  ;;  %1720 = vrcp.f32 %v1068_v44 }
  0xe9   :  { %v1709_v2 = vpop.eup %1708  ;;  %v1006_v58 = vld [vmem:[#allocation2 + $0xd8] sm:$0xff]  ;;  %1722 = vrcp.f32 %v1061_v46  ;;  %v1005_v60 = vld [vmem:[#allocation2 + $0xd0] sm:$0xff] }
  0xea   :  { %v1711_v51 = vpop.eup %1710  ;;  %975 = vst.msk [vmem:[#allocation2 + $0xf8] sm:$0xff] %vm77_vm0, %v942_v54  ;;  %974 = vst.msk [vmem:[#allocation2 + $0xf0] sm:$0xff] %vm77_vm0, %v941_v56  ;;  %v1158_v25 = vsel %vm1030_vm1, %v1709_v2, 0.0  ;;  %v1070_v55 = vmax.f32 %v1006_v58, 1.0  ;;  %vm1034_vm0 = vcmp.gt.f32.partialorder %v2137_v27, 0.0  ;;  %v1069_v16 = vmax.f32 %v1005_v60, 1.0 }
  0xeb   :  { %1255 = vperm.xlu1 %1631, %v1149_v53   ;;  %1300 = vperm.xlu0 %1630, %v1158_v25   ;;  %v1151_v8 = vsel %vm1023_vm2, %v1711_v51, 0.0  ;;  %vm1038_vm8 = vcmp.gt.f32.partialorder %v1006_v58, 0.0  ;;  %vm1037_vm14 = vcmp.gt.f32.partialorder %v1005_v60, 0.0 }
  0xec   :  { %1724 = vrcp.f32 %v1070_v55 }
  0xed   :  { %v1713_v40 = vpop.eup %1712  ;;  %v1008_v61 = vld [vmem:[#allocation2 + $0xe8] sm:$0xff]  ;;  %1726 = vrcp.f32 %v1063_v57  ;;  %v1007_v18 = vld [vmem:[#allocation2 + $0xe0] sm:$0xff] }
  0xee   :  { %v1715_v31 = vpop.eup %1714  ;;  %v1160_v37 = vsel %vm1032_vm3, %v1713_v40, 0.0  ;;  %v1072_v62 = vmax.f32 %v1008_v61, 1.0  ;;  %v1071_v0 = vmax.f32 %v1007_v18, 1.0  ;;  %vm1040_vm10 = vcmp.gt.f32.partialorder %v1008_v61, 0.0 }
  0xef   :  { %1265 = vperm.xlu1 %1631, %v1151_v8   ;;  %1310 = vperm.xlu0 %1630, %v1160_v37   ;;  %v1153_v5 = vsel %vm1025_vm4, %v1715_v31, 0.0  ;;  %vm1039_vm15 = vcmp.gt.f32.partialorder %v1007_v18, 0.0 }
  0xf0   :  { %1728 = vrcp.f32 %v1072_v62 }
  0xf1   :  { %v1717_v4 = vpop.eup %1716  ;;  %v1010_v24 = vld [vmem:[#allocation2 + $0xf8] sm:$0xff]  ;;  %1730 = vrcp.f32 %v1065_v63  ;;  %v1009_v20 = vld [vmem:[#allocation2 + $0xf0] sm:$0xff] }
  0xf2   :  { %v1162_v6 = vsel %vm1034_vm0, %v1717_v4, 0.0  ;;  %v1074_v7 = vmax.f32 %v1010_v24, 1.0  ;;  %v1719_v49 = vpop.eup %1718  ;;  %v1073_v27 = vmax.f32 %v1009_v20, 1.0  ;;  %vm1042_vm12 = vcmp.gt.f32.partialorder %v1010_v24, 0.0 }
  0xf3   :  { %1275 = vperm.xlu1 %1631, %v1153_v5   ;;  %1320 = vperm.xlu0 %1630, %v1162_v6   ;;  %v1155_v13 = vsel %vm1027_vm5, %v1719_v49, 0.0  ;;  %vm1041_vm1 = vcmp.gt.f32.partialorder %v1009_v20, 0.0 }
  0xf4   :  { %1732 = vrcp.f32 %v1074_v7 }
  0xf5   :  { %v1721_v10 = vpop.eup %1720  ;;  %1734 = vrcp.f32 %v1067_v48 }
  0xf6   :  { %v1164_v15 = vsel %vm1036_vm6, %v1721_v10, 0.0  ;;  %v1723_v17 = vpop.eup %1722  ;;  %1736 = vrcp.f32 %v1069_v16 }
  0xf7   :  { %1285 = vperm.xlu1 %1631, %v1155_v13   ;;  %1330 = vperm.xlu0 %1630, %v1164_v15   ;;  %v1157_v12 = vsel %vm1029_vm7, %v1723_v17, 0.0  ;;  %1738 = vrcp.f32 %v1071_v0 }
  0xf8   :  { %1740 = vrcp.f32 %v1073_v27 }
  0xf9   :  { %v1725_v11 = vpop.eup %1724 }
  0xfa   :  { %v1166_v3 = vsel %vm1038_vm8, %v1725_v11, 0.0  ;;  %v1727_v19 = vpop.eup %1726 }
  0xfb   :  { %1295 = vperm.xlu1 %1631, %v1157_v12   ;;  %1340 = vperm.xlu0 %1630, %v1166_v3   ;;  %v1159_v22 = vsel %vm1031_vm9, %v1727_v19, 0.0 }
  0xfd   :  { %v1729_v21 = vpop.eup %1728 }
  0xfe   :  { %v1168_v23 = vsel %vm1040_vm10, %v1729_v21, 0.0  ;;  %v1731_v28 = vpop.eup %1730 }
  0xff   :  { %1305 = vperm.xlu1 %1631, %v1159_v22   ;;  %1350 = vperm.xlu0 %1630, %v1168_v23   ;;  %v1161_v29 = vsel %vm1033_vm11, %v1731_v28, 0.0 }
 0x101   :  { %v1733_v1 = vpop.eup %1732 }
 0x102   :  { %v1170_v30 = vsel %vm1042_vm12, %v1733_v1, 0.0  ;;  %v1735_v32 = vpop.eup %1734 }
 0x103   :  { %1315 = vperm.xlu1 %1631, %v1161_v29   ;;  %1360 = vperm.xlu0 %1630, %v1170_v30   ;;  %v1509_v33 = vpop.f32.mrf.mxu0  ;;  %v2175_v34 = vpop.f32.mrf.mxu1  ;;  %v1163_v38 = vsel %vm1035_vm13, %v1735_v32, 0.0 }
 0x104   :  { %v1737_v39 = vpop.eup %1736 }
 0x105   :  { %v1510_v35 = vpop.f32.mrf.mxu0  ;;  %v2177_v36 = vpop.f32.mrf.mxu1  ;;  %v1165_v14 = vsel %vm1037_vm14, %v1737_v39, 0.0 }
 0x106   :  { %v1739_v43 = vpop.eup %1738  ;;  %v1511_v11 = vadd.f32 %v1510_v35, %v1509_v33 }
 0x107   :  { %1325 = vperm.xlu1 %1631, %v1163_v38   ;;  %v1512_v41 = vpop.f32.mrf.mxu0  ;;  %v2179_v45 = vpop.f32.mrf.mxu1  ;;  %v1167_v52 = vsel %vm1039_vm15, %v1739_v43, 0.0 }
 0x108   :  { %v1741_v54 = vpop.eup %1740 }
 0x109   :  { %v1513_v9 = vpop.f32.mrf.mxu0  ;;  %v2181_v42 = vpop.f32.mrf.mxu1  ;;  %v1169_v58 = vsel %vm1041_vm1, %v1741_v54, 0.0 }
 0x10a   :  { %v1514_v0 = vadd.f32 %v1513_v9, %v1512_v41 }
 0x10b   :  { %1335 = vperm.xlu1 %1631, %v1165_v14   ;;  %v1515_v44 = vpop.f32.mrf.mxu0  ;;  %v2183_v46 = vpop.f32.mrf.mxu1 }
 0x10d   :  { %v1516_v50 = vpop.f32.mrf.mxu0  ;;  %v2185_v26 = vpop.f32.mrf.mxu1 }
 0x10e   :  { %v1517_v22 = vadd.f32 %v1516_v50, %v1515_v44 }
 0x10f   :  { %1345 = vperm.xlu1 %1631, %v1167_v52   ;;  %v1518_v56 = vpop.f32.mrf.mxu0  ;;  %v2187_v2 = vpop.f32.mrf.mxu1 }
 0x111   :  { %v1519_v53 = vpop.f32.mrf.mxu0  ;;  %v2189_v25 = vpop.f32.mrf.mxu1 }
 0x112   :  { %v1520_v29 = vadd.f32 %v1519_v53, %v1518_v56 }
 0x113   :  { %1355 = vperm.xlu1 %1631, %v1169_v58   ;;  %v1521_v51 = vpop.f32.mrf.mxu0  ;;  %v2191_v59 = vpop.f32.mrf.mxu1 }
 0x115   :  { %v1522_v55 = vpop.f32.mrf.mxu0  ;;  %v2193_v61 = vpop.f32.mrf.mxu1 }
 0x116   :  { %v1523_v38 = vadd.f32 %v1522_v55, %v1521_v51 }
 0x117   :  { %v1524_v57 = vpop.f32.mrf.mxu0  ;;  %v2195_v62 = vpop.f32.mrf.mxu1 }
 0x119   :  { %v1525_v40 = vpop.f32.mrf.mxu0  ;;  %v2199_v4 = vpop.f32.mrf.mxu1 }
 0x11a   :  { %v1526_v43 = vadd.f32 %v1525_v40, %v1524_v57 }
 0x11b   :  { %v1527_v8 = vpop.f32.mrf.mxu0  ;;  %v2203_v6 = vpop.f32.mrf.mxu1 }
 0x11d   :  { %v1528_v31 = vpop.f32.mrf.mxu0  ;;  %v2207_v49 = vpop.f32.mrf.mxu1 }
 0x11e   :  { %v1529_v53 = vadd.f32 %v1528_v31, %v1527_v8 }
 0x11f   :  { %v1530_v37 = vpop.f32.mrf.mxu0  ;;  %v2211_v13 = vpop.f32.mrf.mxu1 }
 0x121   :  { %v1531_v63 = vpop.f32.mrf.mxu0  ;;  %v2213_v16 = vpop.f32.mrf.mxu1 }
 0x123   :  { %v2197_v47 = vpop.f32.mrf.mxu0  ;;  %v2217_v18 = vpop.f32.mrf.mxu1 }
 0x125   :  { %v2201_v5 = vpop.f32.mrf.mxu0  ;;  %v2221_v3 = vpop.f32.mrf.mxu1 }
 0x127   :  { %v1536_v24 = vpop.f32.mrf.mxu0  ;;  %v2223_v20 = vpop.f32.mrf.mxu1 }
 0x129   :  { %v1537_v7 = vpop.f32.mrf.mxu0  ;;  %v2225_v28 = vpop.f32.mrf.mxu1 }
 0x12a   :  { %v1538_v39 = vadd.f32 %v1537_v7, %v1536_v24  ;;  %v1532_v7 = vadd.f32 %v1531_v63, %v1530_v37  ;;  %v1562_v37 = vadd.f32 %v2181_v42, %v2179_v45 }
 0x12b   :  { %v2205_v48 = vpop.f32.mrf.mxu0  ;;  %v2229_v33 = vpop.f32.mrf.mxu1 }
 0x12d   :  { %v2209_v60 = vpop.f32.mrf.mxu0  ;;  %v2231_v14 = vpop.f32.mrf.mxu1 }
 0x12f   :  { %v1542_v10 = vpop.f32.mrf.mxu0  ;;  %v2233_v56 = vpop.f32.mrf.mxu1 }
 0x131   :  { %v1543_v15 = vpop.f32.mrf.mxu0  ;;  %v1591_v24 = vpop.f32.mrf.mxu1 }
 0x132   :  { %v1544_v50 = vadd.f32 %v1543_v15, %v1542_v10 }
 0x133   :  { %v2215_v17 = vpop.f32.mrf.mxu0 }
 0x135   :  { %v2219_v12 = vpop.f32.mrf.mxu0 }
 0x136   :  { %v1547_v45 = vadd.f32 %v2219_v12, %v2215_v17 }
 0x137   :  { %v1548_v19 = vpop.f32.mrf.mxu0 }
 0x139   :  { %v1549_v27 = vpop.f32.mrf.mxu0 }
 0x13b   :  { %v2227_v32 = vpop.f32.mrf.mxu0 }
 0x13d   :  { %v1552_v9 = vpop.f32.mrf.mxu0 }
 0x13f   :  { %v1554_v54 = vpop.f32.mrf.mxu0 }
 0x141   :  { %v1555_v55 = vpop.f32.mrf.mxu0 }
 0x142   :  { %v1206_v21 = vpop.permute.xlu0 %1205  ;;  %v1556_v40 = vadd.f32 %v1555_v55, %v1554_v54  ;;  %v1553_v54 = vadd.f32 %v1552_v9, %v2227_v32 }
 0x143   :  { %v1363_v23 = vmul.f32 %v1511_v11, %v1206_v21 }
 0x145   :  { %1395 = vst [vmem:[#allocation8] sm:$0xff] %v1363_v23  ;;  %v2235_v23 = vpop.f32.mrf.mxu1 }
 0x146   :  { %v1211_v1 = vpop.permute.xlu1 %1210 }
 0x147   :  { %v1364_v30 = vmul.f32 %v1514_v0, %v1211_v1  ;;  %v1550_v0 = vadd.f32 %v1549_v27, %v1548_v19  ;;  %v1535_v19 = vadd.f32 %v2201_v5, %v2197_v47  ;;  %v1568_v47 = vadd.f32 %v2189_v25, %v2187_v2 }
 0x149   :  { %1396 = vst [vmem:[#allocation8 + $0x8] sm:$0xff] %v1364_v30 }
 0x14a   :  { %v1216_v35 = vpop.permute.xlu1 %1215 }
 0x14b   :  { %v1365_v41 = vmul.f32 %v1517_v22, %v1216_v35  ;;  %v1541_v35 = vadd.f32 %v2209_v60, %v2205_v48 }
 0x14d   :  { %1397 = vst [vmem:[#allocation8 + $0x10] sm:$0xff] %v1365_v41 }
 0x14e   :  { %v1221_v44 = vpop.permute.xlu1 %1220 }
 0x14f   :  { %v1366_v52 = vmul.f32 %v1520_v29, %v1221_v44  ;;  %v2239_v29 = vpop.f32.mrf.mxu1 }
 0x151   :  { %1398 = vst [vmem:[#allocation8 + $0x18] sm:$0xff] %v1366_v52  ;;  %v1596_v41 = vpop.f32.mrf.mxu1  ;;  %v1574_v52 = vadd.f32 %v2199_v4, %v2195_v62  ;;  %v1559_v62 = vadd.f32 %v2177_v36, %v2175_v34  ;;  %v1586_v4 = vadd.f32 %v2225_v28, %v2223_v20  ;;  %v1571_v28 = vadd.f32 %v2193_v61, %v2191_v59 }
 0x152   :  { %v1226_v58 = vpop.permute.xlu1 %1225  ;;  %v1251_v11 = vpop.permute.xlu0 %1250 }
 0x153   :  { %v1367_v21 = vmul.f32 %v1523_v38, %v1226_v58  ;;  %v1372_v51 = vmul.f32 %v1538_v39, %v1251_v11  ;;  %v1580_v58 = vadd.f32 %v2213_v16, %v2211_v13 }
 0x155   :  { %1399 = vst [vmem:[#allocation8 + $0x20] sm:$0xff] %v1367_v21  ;;  %1404 = vst [vmem:[#allocation8 + $0x48] sm:$0xff] %v1372_v51  ;;  %v1592_v51 = vadd.f32 %v1591_v24, %v2233_v56 }
 0x156   :  { %v1231_v22 = vpop.permute.xlu1 %1230  ;;  %v1261_v57 = vpop.permute.xlu0 %1260 }
 0x157   :  { %v1368_v10 = vmul.f32 %v1526_v43, %v1231_v22  ;;  %v1374_v15 = vmul.f32 %v1544_v50, %v1261_v57  ;;  %v1597_v50 = vpop.f32.mrf.mxu1 }
 0x158   :  { %v1598_v34 = vadd.f32 %v1597_v50, %v1596_v41 }
 0x159   :  { %1400 = vst [vmem:[#allocation8 + $0x28] sm:$0xff] %v1368_v10  ;;  %1406 = vst [vmem:[#allocation8 + $0x58] sm:$0xff] %v1374_v15 }
 0x15a   :  { %v1236_v8 = vpop.permute.xlu1 %1235  ;;  %v1271_v31 = vpop.permute.xlu0 %1270 }
 0x15b   :  { %v1369_v27 = vmul.f32 %v1529_v53, %v1236_v8  ;;  %v1376_v1 = vmul.f32 %v1550_v0, %v1271_v31  ;;  %v1599_v53 = vpop.f32.mrf.mxu1 }
 0x15d   :  { %1401 = vst [vmem:[#allocation8 + $0x30] sm:$0xff] %v1369_v27  ;;  %1408 = vst [vmem:[#allocation8 + $0x68] sm:$0xff] %v1376_v1  ;;  %v1600_v21 = vpop.f32.mrf.mxu1  ;;  %v1583_v1 = vadd.f32 %v2221_v3, %v2217_v18 }
 0x15e   :  { %v1241_v63 = vpop.permute.xlu1 %1240  ;;  %v1281_v30 = vpop.permute.xlu0 %1280  ;;  %v1601_v18 = vadd.f32 %v1600_v21, %v1599_v53 }
 0x15f   :  { %v1370_v38 = vmul.f32 %v1532_v7, %v1241_v63  ;;  %v1378_v39 = vmul.f32 %v1556_v40, %v1281_v30  ;;  %v1602_v55 = vpop.f32.mrf.mxu1  ;;  %v1565_v7 = vadd.f32 %v2185_v26, %v2183_v46  ;;  %v1577_v46 = vadd.f32 %v2207_v49, %v2203_v6 }
 0x160   :  { %v1589_v30 = vadd.f32 %v2231_v14, %v2229_v33 }
 0x161   :  { %1402 = vst [vmem:[#allocation8 + $0x38] sm:$0xff] %v1370_v38  ;;  %1410 = vst [vmem:[#allocation8 + $0x78] sm:$0xff] %v1378_v39  ;;  %v1603_v20 = vpop.f32.mrf.mxu1 }
 0x162   :  { %v1246_v5 = vpop.permute.xlu1 %1245  ;;  %v1291_v43 = vpop.permute.xlu0 %1290  ;;  %v1604_v10 = vadd.f32 %v1603_v20, %v1602_v55 }
 0x163   :  { %v1371_v42 = vmul.f32 %v1535_v19, %v1246_v5  ;;  %v1380_v44 = vmul.f32 %v1562_v37, %v1291_v43 }
 0x165   :  { %1403 = vst [vmem:[#allocation8 + $0x40] sm:$0xff] %v1371_v42  ;;  %1412 = vst [vmem:[#allocation8 + $0x88] sm:$0xff] %v1380_v44 }
 0x166   :  { %v1256_v48 = vpop.permute.xlu1 %1255  ;;  %v1301_v60 = vpop.permute.xlu0 %1300 }
 0x167   :  { %v1373_v2 = vmul.f32 %v1541_v35, %v1256_v48  ;;  %v1382_v25 = vmul.f32 %v1568_v47, %v1301_v60  ;;  %v1595_v35 = vadd.f32 %v2239_v29, %v2235_v23 }
 0x169   :  { %1405 = vst [vmem:[#allocation8 + $0x50] sm:$0xff] %v1373_v2  ;;  %1414 = vst [vmem:[#allocation8 + $0x98] sm:$0xff] %v1382_v25 }
 0x16a   :  { %v1266_v17 = vpop.permute.xlu1 %1265  ;;  %v1311_v12 = vpop.permute.xlu0 %1310 }
 0x16b   :  { %v1375_v11 = vmul.f32 %v1547_v45, %v1266_v17  ;;  %v1384_v0 = vmul.f32 %v1574_v52, %v1311_v12 }
 0x16d   :  { %1407 = vst [vmem:[#allocation8 + $0x60] sm:$0xff] %v1375_v11  ;;  %1416 = vst [vmem:[#allocation8 + $0xa8] sm:$0xff] %v1384_v0 }
 0x16e   :  { %v1276_v32 = vpop.permute.xlu1 %1275  ;;  %v1321_v9 = vpop.permute.xlu0 %1320 }
 0x16f   :  { %v1377_v13 = vmul.f32 %v1553_v54, %v1276_v32  ;;  %v1386_v16 = vmul.f32 %v1580_v58, %v1321_v9 }
 0x171   :  { %1409 = vst [vmem:[#allocation8 + $0x70] sm:$0xff] %v1377_v13  ;;  %1418 = vst [vmem:[#allocation8 + $0xb8] sm:$0xff] %v1386_v16 }
 0x172   :  { %v1286_v22 = vpop.permute.xlu1 %1285  ;;  %v1331_v57 = vpop.permute.xlu0 %1330 }
 0x173   :  { %v1379_v36 = vmul.f32 %v1559_v62, %v1286_v22  ;;  %v1388_v40 = vmul.f32 %v1586_v4, %v1331_v57 }
 0x175   :  { %1411 = vst [vmem:[#allocation8 + $0x80] sm:$0xff] %v1379_v36  ;;  %1420 = vst [vmem:[#allocation8 + $0xc8] sm:$0xff] %v1388_v40 }
 0x176   :  { %v1296_v56 = vpop.permute.xlu1 %1295  ;;  %v1341_v24 = vpop.permute.xlu0 %1340 }
 0x177   :  { %v1381_v15 = vmul.f32 %v1565_v7, %v1296_v56  ;;  %v1390_v8 = vmul.f32 %v1592_v51, %v1341_v24 }
 0x179   :  { %1413 = vst [vmem:[#allocation8 + $0x90] sm:$0xff] %v1381_v15  ;;  %1422 = vst [vmem:[#allocation8 + $0xd8] sm:$0xff] %v1390_v8 }
 0x17a   :  { %v1306_v26 = vpop.permute.xlu1 %1305  ;;  %v1351_v31 = vpop.permute.xlu0 %1350 }
 0x17b   :  { %v1383_v19 = vmul.f32 %v1571_v28, %v1306_v26  ;;  %v1392_v27 = vmul.f32 %v1598_v34, %v1351_v31 }
 0x17d   :  { %1415 = vst [vmem:[#allocation8 + $0xa0] sm:$0xff] %v1383_v19  ;;  %1424 = vst [vmem:[#allocation8 + $0xe8] sm:$0xff] %v1392_v27 }
 0x17e   :  { %v1316_v59 = vpop.permute.xlu1 %1315  ;;  %v1361_v61 = vpop.permute.xlu0 %1360 }
 0x17f   :  { %v1385_v37 = vmul.f32 %v1577_v46, %v1316_v59  ;;  %v1394_v63 = vmul.f32 %v1604_v10, %v1361_v61 }
 0x181   :  { %1417 = vst [vmem:[#allocation8 + $0xb0] sm:$0xff] %v1385_v37  ;;  %1426 = vst [vmem:[#allocation8 + $0xf8] sm:$0xff] %v1394_v63 }
 0x182   :  { %v1326_v6 = vpop.permute.xlu1 %1325 }
 0x183   :  { %v1387_v49 = vmul.f32 %v1583_v1, %v1326_v6 }
 0x185   :  { %1419 = vst [vmem:[#allocation8 + $0xc0] sm:$0xff] %v1387_v49 }
 0x186   :  { %v1336_v38 = vpop.permute.xlu1 %1335 }
 0x187   :  { %v1389_v39 = vmul.f32 %v1589_v30, %v1336_v38 }
 0x189   :  { %1421 = vst [vmem:[#allocation8 + $0xd0] sm:$0xff] %v1389_v39 }
 0x18a   :  { %v1346_v3 = vpop.permute.xlu1 %1345 }
 0x18b   :  { %v1391_v41 = vmul.f32 %v1595_v35, %v1346_v3 }
 0x18d   :  { %1423 = vst [vmem:[#allocation8 + $0xe0] sm:$0xff] %v1391_v41 }
 0x18e   :  { %v1356_v47 = vpop.permute.xlu1 %1355 }
 0x18f   :  { %v1393_v5 = vmul.f32 %v1601_v18, %v1356_v47 }
 0x191   :  { %1425 = vst [vmem:[#allocation8 + $0xf0] sm:$0xff] %v1393_v5 }
 0x192   :  { %1793 = shalt.err (!%p1790_p0)
}
 0x193   :  { %1438 = dma.vmem_to_hbm [thread:$0]  %s1433_s1, 4096, %s2279_s2, [#allocation5], %s1809_s12, %s1809_s12, %s1810_s13  }
 0x194   :  { %1806 = dma.done.wait [#allocation5], 4096  }
 0x195   :  { %1807 = vsyncadd [#allocation5], 4294963200 }
 0x196   :  { %1442 = vsyncpa [#allocation4], 1 }
 0x197   :  { %1443 = vsyncpa [#allocation7], 1 }
 0x198   :  { %1444 = vsyncpa [#allocation5], 1 }

</bundles_post_ra>
